<compile_context>
chip_gen: v6e
topology: v6e:2x2x1
jax: 0.10.0
libtpu: 0.0.40
codegen_flags: <defaults>
</compile_context>

<pallas_src>
import functools

import jax
import jax.numpy as jnp
from jax.experimental import pallas as pl
from jax.experimental.pallas import tpu as pltpu


def _mha_kernel(q_ref, k_ref, wq_ref, wkv_ref, o_ref, kv_ref,
                *, num_heads, compute_dtype):
    """One grid step = (batch element b, query tile qi).

    q_ref  : [1, tq, Dq]        VMEM (per q-tile)
    k_ref  : [1, T_k, Dk]       VMEM (same block across qi -> fetched once per b)
    wq_ref : [Dq, U]            VMEM (grid-invariant), scale already folded in
    wkv_ref: [Dk, 2U]           VMEM (grid-invariant), [W_key | W_value]
    o_ref  : [1, tq, U]         VMEM
    kv_ref : [2, H, T_k, hd]    VMEM scratch, persists across qi (K at [0], V at [1])
    """
    U = wq_ref.shape[1]
    hd = U // num_heads
    tq = q_ref.shape[1]
    t_k = k_ref.shape[1]

    # ---- K / V projection: one fused matmul, only on the first q-tile of each batch elem.
    @pl.when(pl.program_id(1) == 0)
    def _():
        k_in = k_ref[0].astype(compute_dtype)                               # [T_k, Dk]
        kv = jnp.dot(k_in, wkv_ref[...],
                     preferred_element_type=jnp.float32)                    # [T_k, 2U] f32
        kv = kv.astype(compute_dtype)
        # Cache head-major so per-q-tile compute needs no further relayout.
        kv_ref[0] = kv[:, :U].reshape(t_k, num_heads, hd).transpose(1, 0, 2)  # K: [H, T_k, hd]
        kv_ref[1] = kv[:, U:].reshape(t_k, num_heads, hd).transpose(1, 0, 2)  # V: [H, T_k, hd]

    # ---- Q projection (scale folded into the weight by the wrapper).
    q_in = q_ref[0].astype(compute_dtype)                                   # [tq, Dq]
    q_proj = jnp.dot(q_in, wq_ref[...],
                     preferred_element_type=jnp.float32)                    # [tq, U] f32
    qh = q_proj.reshape(tq, num_heads, hd).transpose(1, 0, 2)               # [H, tq, hd]
    qh = qh.astype(compute_dtype)

    kh = kv_ref[0]                                                          # [H, T_k, hd]
    vh = kv_ref[1]                                                          # [H, T_k, hd]

    # ---- Head-batched scores + softmax (math in f32, v5e-friendly).
    s = jnp.einsum('hqd,hkd->hqk', qh, kh,
                   preferred_element_type=jnp.float32)                      # [H, tq, T_k]
    m = jnp.max(s, axis=-1, keepdims=True)
    p = jnp.exp(s - m)                                                      # unnormalized
    l = jnp.sum(p, axis=-1, keepdims=True)                                  # [H, tq, 1]

    # ---- PV matmul first, then normalize with an EUP reciprocal on [H, tq, 1].
    o = jnp.einsum('hqk,hkd->hqd', p.astype(compute_dtype), vh,
                   preferred_element_type=jnp.float32)                      # [H, tq, hd]
    inv = pl.reciprocal(l, approx=True)                                     # [H, tq, 1]
    out = (o * inv).transpose(1, 0, 2).reshape(tq, U)                       # [tq, U]

    # ---- Single full-width (lane-dense) store.
    o_ref[0] = out.astype(o_ref.dtype)


def _choose_q_tile(t_q, max_tile):
    """Largest q-tile <= max_tile that divides T_q and is a multiple of 8 (or T_q itself)."""
    if t_q <= max_tile:
        return t_q
    start = max_tile - (max_tile % 8)
    for t in range(start, 7, -8):
        if t_q % t == 0:
            return t
    return t_q  # fallback: no tiling


def multi_head_attention(query, key, w_query, w_key, w_value, *,
                         num_heads, key_dim, mxu_dtype=None, max_q_tile=512):
    """query: [N, T_q, Dq], key: [N, T_k, Dk], weights: [in, out].

    mxu_dtype: optional dtype for MXU operands (e.g. jnp.bfloat16 on v6e/v7x); softmax and
               accumulation stay in f32. Default None keeps the input dtype (exact semantics).
    """
    N, T_q, Dq = query.shape
    _, T_k, Dk = key.shape
    U = w_query.shape[1]
    assert U % num_heads == 0, "num_units must be divisible by num_heads"
    hd = U // num_heads

    compute_dtype = jnp.dtype(mxu_dtype) if mxu_dtype is not None else jnp.dtype(query.dtype)

    # Fold 1/sqrt(key_dim) into the query projection (linear -> identical math),
    # and fuse the K / V projections into a single [Dk, 2U] weight.
    scale = 1.0 / (float(key_dim) ** 0.5)
    w_q_scaled = (w_query * scale).astype(compute_dtype)
    w_kv = jnp.concatenate([w_key, w_value], axis=1).astype(compute_dtype)

    tq = _choose_q_tile(T_q, max_q_tile)
    n_qt = T_q // tq

    kernel = functools.partial(_mha_kernel, num_heads=num_heads,
                               compute_dtype=compute_dtype)

    return pl.pallas_call(
        kernel,
        out_shape=jax.ShapeDtypeStruct((N, T_q, U), query.dtype),
        grid_spec=pltpu.PrefetchScalarGridSpec(
            num_scalar_prefetch=0,
            grid=(N, n_qt),
            in_specs=[
                pl.BlockSpec((1, tq, Dq), lambda b, qi: (b, qi, 0)),
                pl.BlockSpec((1, T_k, Dk), lambda b, qi: (b, 0, 0)),
                pl.BlockSpec((Dq, U), lambda b, qi: (0, 0)),
                pl.BlockSpec((Dk, 2 * U), lambda b, qi: (0, 0)),
            ],
            out_specs=pl.BlockSpec((1, tq, U), lambda b, qi: (b, qi, 0)),
            scratch_shapes=[pltpu.VMEM((2, num_heads, T_k, hd), compute_dtype)],
        ),
        compiler_params=pltpu.CompilerParams(
            # qi carries the K/V scratch -> must stay "arbitrary"; batch is parallel (megacore).
            dimension_semantics=("parallel", "arbitrary")),
    )(query, key, w_q_scaled, w_kv)


def _reference(query, key, w_query, w_key, w_value, *, num_heads, key_dim):
    """Plain-JAX reference mirroring the PyTorch forward."""
    Q = query @ w_query      # [N, T_q, U]
    K = key @ w_key          # [N, T_k, U]
    V = key @ w_value        # [N, T_k, U]
    Qh = jnp.stack(jnp.split(Q, num_heads, axis=2), axis=0)
    Kh = jnp.stack(jnp.split(K, num_heads, axis=2), axis=0)
    Vh = jnp.stack(jnp.split(V, num_heads, axis=2), axis=0)
    s = jnp.einsum("hnqd,hnkd->hnqk", Qh, Kh) / (key_dim ** 0.5)
    p = jax.nn.softmax(s, axis=3)
    o = jnp.einsum("hnqk,hnkd->hnqd", p, Vh)          # [h, N, T_q, hd]
    return jnp.concatenate(jnp.split(o, num_heads, axis=0), axis=3)[0]


if __name__ == "__main__":
    # Small, module-consistent shapes.
    N, T_q, T_k = 2, 8, 8
    query_dim, key_dim = 16, 16
    num_units, num_heads = 32, 4

    root = jax.random.PRNGKey(0)
    kq, kk, kwq, kwk, kwv = jax.random.split(root, 5)

    query = jax.random.normal(kq, (N, T_q, query_dim), dtype=jnp.float32)
    key = jax.random.normal(kk, (N, T_k, key_dim), dtype=jnp.float32)

    # Deterministic weights (stored as [in, out], i.e. transpose of nn.Linear.weight).
    w_query = jax.random.normal(kwq, (query_dim, num_units), dtype=jnp.float32) * 0.1
    w_key = jax.random.normal(kwk, (key_dim, num_units), dtype=jnp.float32) * 0.1
    w_value = jax.random.normal(kwv, (key_dim, num_units), dtype=jnp.float32) * 0.1

    out = multi_head_attention(query, key, w_query, w_key, w_value,
                               num_heads=num_heads, key_dim=key_dim)
    out = jax.block_until_ready(out)
    ref = _reference(query, key, w_query, w_key, w_value,
                     num_heads=num_heads, key_dim=key_dim)
    assert out.shape == (N, T_q, num_units)
    # Tolerance accounts for the approximate EUP reciprocal in the softmax normalization.
    assert jnp.allclose(out, ref, atol=2e-3, rtol=2e-3), float(jnp.max(jnp.abs(out - ref)))

    # Exercise the multi-q-tile path (KV projected once per batch elem, cached across q tiles).
    kq2, kk2 = jax.random.split(jax.random.PRNGKey(1), 2)
    T_q2, T_k2 = 16, 16
    query2 = jax.random.normal(kq2, (N, T_q2, query_dim), dtype=jnp.float32)
    key2 = jax.random.normal(kk2, (N, T_k2, key_dim), dtype=jnp.float32)
    out2 = multi_head_attention(query2, key2, w_query, w_key, w_value,
                                num_heads=num_heads, key_dim=key_dim, max_q_tile=8)
    out2 = jax.block_until_ready(out2)
    ref2 = _reference(query2, key2, w_query, w_key, w_value,
                      num_heads=num_heads, key_dim=key_dim)
    assert out2.shape == (N, T_q2, num_units)
    assert jnp.allclose(out2, ref2, atol=2e-3, rtol=2e-3), float(jnp.max(jnp.abs(out2 - ref2)))

    print("KERNEL_OK")
</pallas_src>

<mosaic_0001>
module attributes {stable_mosaic.version = 11 : i64} {
  func.func @_mha_kernel(%arg0: i32, %arg1: i32, %arg2: memref<1x8x16xf32, #tpu.memory_space<vmem>>, %arg3: memref<1x8x16xf32, #tpu.memory_space<vmem>>, %arg4: memref<16x32xf32, #tpu.memory_space<vmem>>, %arg5: memref<16x64xf32, #tpu.memory_space<vmem>>, %arg6: memref<1x8x32xf32, #tpu.memory_space<vmem>>, %arg7: memref<2x4x8x8xf32, #tpu.memory_space<vmem>>) attributes {dimension_semantics = [#tpu.dimension_semantics<parallel>, #tpu.dimension_semantics<arbitrary>], iteration_bounds = array<i64: 2, 1>, scalar_prefetch = 0 : i64, scratch_operands = 1 : i64, tpu.core_type = #tpu.core_type<tc>, window_params = [{transform_indices = @transform_0, window_bounds = array<i64: 1, 8, 16>}, {transform_indices = @transform_1, window_bounds = array<i64: 1, 8, 16>}, {pipeline_mode = #tpu.pipeline_mode<synchronous>, transform_indices = @transform_2, window_bounds = array<i64: 16, 32>}, {pipeline_mode = #tpu.pipeline_mode<synchronous>, transform_indices = @transform_3, window_bounds = array<i64: 16, 64>}, {transform_indices = @transform_4, window_bounds = array<i64: 1, 8, 32>}]} {
    %c0_i32 = arith.constant 0 : i32
    %0 = arith.cmpi eq, %arg1, %c0_i32 : i32
    %1 = arith.extui %0 : i1 to i32
    %c0_i32_0 = arith.constant 0 : i32
    %2 = arith.cmpi ne, %1, %c0_i32_0 : i32
    scf.if %2 {
      %c0_19 = arith.constant 0 : index
      %c0_20 = arith.constant 0 : index
      %c0_21 = arith.constant 0 : index
      %30 = vector.load %arg3[%c0_19, %c0_20, %c0_21] : memref<1x8x16xf32, #tpu.memory_space<vmem>>, vector<1x8x16xf32>
      %31 = vector.shape_cast %30 : vector<1x8x16xf32> to vector<8x16xf32>
      %c0_22 = arith.constant 0 : index
      %c0_23 = arith.constant 0 : index
      %32 = vector.load %arg5[%c0_22, %c0_23] : memref<16x64xf32, #tpu.memory_space<vmem>>, vector<16x64xf32>
      %cst_24 = arith.constant dense<0.000000e+00> : vector<8x64xf32>
      %33 = tpu.matmul %31, %32, %cst_24 {dimension_numbers = #tpu.dot_dimension_numbers<[1], [0], [0], [1], [0, 0, 1, 1], [], []>} : vector<8x16xf32>, vector<16x64xf32>, vector<8x64xf32> -> vector<8x64xf32>
      %34 = vector.extract_strided_slice %33 {offsets = [0, 0], sizes = [8, 32], strides = [1, 1]} : vector<8x64xf32> to vector<8x32xf32>
      %35 = vector.shape_cast %34 : vector<8x32xf32> to vector<8x4x8xf32>
      %36 = tpu.transpose %35, [1, 0, 2] : vector<8x4x8xf32> -> vector<4x8x8xf32>
      %c0_25 = arith.constant 0 : index
      %c0_26 = arith.constant 0 : index
      %c0_27 = arith.constant 0 : index
      %c0_28 = arith.constant 0 : index
      %37 = vector.load %arg7[%c0_25, %c0_26, %c0_27, %c0_28] : memref<2x4x8x8xf32, #tpu.memory_space<vmem>>, vector<1x4x8x8xf32>
      %38 = vector.shape_cast %37 : vector<1x4x8x8xf32> to vector<4x8x8xf32>
      %39 = vector.shape_cast %36 : vector<4x8x8xf32> to vector<1x4x8x8xf32>
      tpu.vector_store %arg7[%c0_25, %c0_26, %c0_27, %c0_28], %39 {strides = array<i32>} : memref<2x4x8x8xf32, #tpu.memory_space<vmem>>, vector<1x4x8x8xf32>,
      %40 = vector.extract_strided_slice %33 {offsets = [0, 32], sizes = [8, 32], strides = [1, 1]} : vector<8x64xf32> to vector<8x32xf32>
      %41 = vector.shape_cast %40 : vector<8x32xf32> to vector<8x4x8xf32>
      %42 = tpu.transpose %41, [1, 0, 2] : vector<8x4x8xf32> -> vector<4x8x8xf32>
      %c1_29 = arith.constant 1 : index
      %c0_30 = arith.constant 0 : index
      %c0_31 = arith.constant 0 : index
      %c0_32 = arith.constant 0 : index
      %43 = vector.load %arg7[%c1_29, %c0_30, %c0_31, %c0_32] : memref<2x4x8x8xf32, #tpu.memory_space<vmem>>, vector<1x4x8x8xf32>
      %44 = vector.shape_cast %43 : vector<1x4x8x8xf32> to vector<4x8x8xf32>
      %45 = vector.shape_cast %42 : vector<4x8x8xf32> to vector<1x4x8x8xf32>
      tpu.vector_store %arg7[%c1_29, %c0_30, %c0_31, %c0_32], %45 {strides = array<i32>} : memref<2x4x8x8xf32, #tpu.memory_space<vmem>>, vector<1x4x8x8xf32>,
    } else {
    }
    %c0 = arith.constant 0 : index
    %c0_1 = arith.constant 0 : index
    %c0_2 = arith.constant 0 : index
    %3 = vector.load %arg2[%c0, %c0_1, %c0_2] : memref<1x8x16xf32, #tpu.memory_space<vmem>>, vector<1x8x16xf32>
    %4 = vector.shape_cast %3 : vector<1x8x16xf32> to vector<8x16xf32>
    %c0_3 = arith.constant 0 : index
    %c0_4 = arith.constant 0 : index
    %5 = vector.load %arg4[%c0_3, %c0_4] : memref<16x32xf32, #tpu.memory_space<vmem>>, vector<16x32xf32>
    %cst = arith.constant dense<0.000000e+00> : vector<8x32xf32>
    %6 = tpu.matmul %4, %5, %cst {dimension_numbers = #tpu.dot_dimension_numbers<[1], [0], [0], [1], [0, 0, 1, 1], [], []>} : vector<8x16xf32>, vector<16x32xf32>, vector<8x32xf32> -> vector<8x32xf32>
    %7 = vector.shape_cast %6 : vector<8x32xf32> to vector<8x4x8xf32>
    %8 = tpu.transpose %7, [1, 0, 2] : vector<8x4x8xf32> -> vector<4x8x8xf32>
    %c0_5 = arith.constant 0 : index
    %c0_6 = arith.constant 0 : index
    %c0_7 = arith.constant 0 : index
    %c0_8 = arith.constant 0 : index
    %9 = vector.load %arg7[%c0_5, %c0_6, %c0_7, %c0_8] : memref<2x4x8x8xf32, #tpu.memory_space<vmem>>, vector<1x4x8x8xf32>
    %10 = vector.shape_cast %9 : vector<1x4x8x8xf32> to vector<4x8x8xf32>
    %c1 = arith.constant 1 : index
    %c0_9 = arith.constant 0 : index
    %c0_10 = arith.constant 0 : index
    %c0_11 = arith.constant 0 : index
    %11 = vector.load %arg7[%c1, %c0_9, %c0_10, %c0_11] : memref<2x4x8x8xf32, #tpu.memory_space<vmem>>, vector<1x4x8x8xf32>
    %12 = vector.shape_cast %11 : vector<1x4x8x8xf32> to vector<4x8x8xf32>
    "tpu.trace_start"() <{level = 10 : i32, message = "hqd,hkd->hqk"}> : () -> ()
    %cst_12 = arith.constant dense<0.000000e+00> : vector<4x8x8xf32>
    %13 = tpu.matmul %8, %10, %cst_12 {dimension_numbers = #tpu.dot_dimension_numbers<[2], [2], [1], [1], [0, 0, 0, 1, 1, 1], [0], [0]>} : vector<4x8x8xf32>, vector<4x8x8xf32>, vector<4x8x8xf32> -> vector<4x8x8xf32>
    "tpu.trace_stop"() : () -> ()
    %cst_13 = arith.constant dense<0xFF800000> : vector<4x8xf32>
    %14 = vector.multi_reduction <maximumf>, %13, %cst_13 [2] : vector<4x8x8xf32> to vector<4x8xf32>
    %15 = vector.shape_cast %14 : vector<4x8xf32> to vector<4x8x1xf32>
    %16 = vector.broadcast %15 : vector<4x8x1xf32> to vector<4x8x8xf32>
    %17 = arith.subf %13, %16 : vector<4x8x8xf32>
    %18 = math.exp %17 : vector<4x8x8xf32>
    %cst_14 = arith.constant dense<0.000000e+00> : vector<4x8xf32>
    %19 = vector.multi_reduction <add>, %18, %cst_14 [2] : vector<4x8x8xf32> to vector<4x8xf32>
    %20 = vector.shape_cast %19 : vector<4x8xf32> to vector<4x8x1xf32>
    "tpu.trace_start"() <{level = 10 : i32, message = "hqk,hkd->hqd"}> : () -> ()
    %cst_15 = arith.constant dense<0.000000e+00> : vector<4x8x8xf32>
    %21 = tpu.matmul %18, %12, %cst_15 {dimension_numbers = #tpu.dot_dimension_numbers<[2], [1], [1], [2], [0, 0, 0, 1, 1, 2], [0], [0]>} : vector<4x8x8xf32>, vector<4x8x8xf32>, vector<4x8x8xf32> -> vector<4x8x8xf32>
    "tpu.trace_stop"() : () -> ()
    %22 = tpu.reciprocal %20 {approx = true} : vector<4x8x1xf32> -> vector<4x8x1xf32>
    %23 = vector.broadcast %22 : vector<4x8x1xf32> to vector<4x8x8xf32>
    %24 = arith.mulf %21, %23 : vector<4x8x8xf32>
    %25 = tpu.transpose %24, [1, 0, 2] : vector<4x8x8xf32> -> vector<8x4x8xf32>
    %26 = vector.shape_cast %25 : vector<8x4x8xf32> to vector<8x32xf32>
    %c0_16 = arith.constant 0 : index
    %c0_17 = arith.constant 0 : index
    %c0_18 = arith.constant 0 : index
    %27 = vector.load %arg6[%c0_16, %c0_17, %c0_18] : memref<1x8x32xf32, #tpu.memory_space<vmem>>, vector<1x8x32xf32>
    %28 = vector.shape_cast %27 : vector<1x8x32xf32> to vector<8x32xf32>
    %29 = vector.shape_cast %26 : vector<8x32xf32> to vector<1x8x32xf32>
    tpu.vector_store %arg6[%c0_16, %c0_17, %c0_18], %29 {strides = array<i32>} : memref<1x8x32xf32, #tpu.memory_space<vmem>>, vector<1x8x32xf32>,
    return
  }
  func.func @transform_0(%arg0: i32, %arg1: i32) -> (i32, i32, i32) {
    %c0_i32 = arith.constant 0 : i32
    %c0_i32_0 = arith.constant 0 : i32
    return %arg0, %arg1, %c0_i32 : i32, i32, i32
  }
  func.func @transform_1(%arg0: i32, %arg1: i32) -> (i32, i32, i32) {
    %c0_i32 = arith.constant 0 : i32
    %c0_i32_0 = arith.constant 0 : i32
    %c0_i32_1 = arith.constant 0 : i32
    return %arg0, %c0_i32, %c0_i32_0 : i32, i32, i32
  }
  func.func @transform_2(%arg0: i32, %arg1: i32) -> (i32, i32) {
    %c0_i32 = arith.constant 0 : i32
    %c0_i32_0 = arith.constant 0 : i32
    %c0_i32_1 = arith.constant 0 : i32
    return %c0_i32, %c0_i32_0 : i32, i32
  }
  func.func @transform_3(%arg0: i32, %arg1: i32) -> (i32, i32) {
    %c0_i32 = arith.constant 0 : i32
    %c0_i32_0 = arith.constant 0 : i32
    %c0_i32_1 = arith.constant 0 : i32
    return %c0_i32, %c0_i32_0 : i32, i32
  }
  func.func @transform_4(%arg0: i32, %arg1: i32) -> (i32, i32, i32) {
    %c0_i32 = arith.constant 0 : i32
    %c0_i32_0 = arith.constant 0 : i32
    return %arg0, %arg1, %c0_i32 : i32, i32, i32
  }
}

</mosaic_0001>

<bundles_post_ra>
// kernel: tpu_custom_call.1
= control target key start
LH: loop header
LB: loop body
LE: loop exit
PB: predicated region body
PF: predicated region fallthrough
CT: control target
= control target key end

     0   :  { %s2662_s0 = inlined_call_operand.hbm [shape: f32[2,8,16], index: 0, kind: input, shape index: {}]   ;;  %s2663_s1 = inlined_call_operand.hbm [shape: f32[2,8,16], index: 1, kind: input, shape index: {}]   ;;  %s2664_s2 = inlined_call_operand.hbm [shape: f32[16,32], index: 2, kind: input, shape index: {}]   ;;  %s2665_s3 = inlined_call_operand.hbm [shape: f32[16,64], index: 3, kind: input, shape index: {}]   ;;  %s2666_s4 = inlined_call_operand.hbm [shape: f32[2,8,32], index: 4, kind: output, shape index: {}]  }
   0x1   :  { %2668 = sst [smem:[#allocation17_spill]] %s2662_s0 }
   0x2   :  { %2669 = sst [smem:[#allocation18_spill]] %s2663_s1 }
   0x3   :  { %9 = vsyncpa [#allocation4], 0 }
   0x4   :  { %11 = vsyncpa [#allocation4 + $0x1], 0 }
   0x5   :  { %12 = vsyncpa [#allocation7], 0 }
   0x6   :  { %14 = vsyncpa [#allocation7 + $0x1], 0 }
   0x7   :  { %15 = vsyncpa [#allocation10], 0 }
   0x8   :  { %16 = vsyncpa [#allocation5], 0 }
   0x9   :  { %18 = vsyncpa [#allocation5 + $0x1], 0  ;;  %s2325_s15 = smov 0   ;;  %s2327_s16 = smov 0  }
   0xa   :  { %s2329_s17 = smov 0   ;;  %s2331_s18 = smov 0  }
   0xb   :  { %s2333_s19 = smov 0   ;;  %s2335_s20 = smov 0  }
   0xc LB: > { %s2356_s21 = sadd.s32 4294967295, %s2280_s20   ;;  %s1846_s22 = sadd.s32 4294967294, %s2280_s20   ;;  %s2280_s20 = sphi %s2335_s20, %s24_s20   ;;  %s2276_s19 = sphi %s2333_s19, %s2689_s19   ;;  %s2272_s18 = sphi %s2331_s18, %s2688_s18   ;;  %s2268_s17 = sphi %s2329_s17, %s2687_s17   ;;  %s2264_s16 = sphi %s2327_s16, %s2686_s16   ;;  %s2260_s15 = sphi %s2325_s15, %s2685_s15  }
   0xd   : > { %p58_p0 = scmp.ne.s32.totalorder %s2264_s16, %s2260_s15  ;;  %p2667_p1 = scmp.eq.s32.totalorder %s2356_s21, 0 }
   0xe   : > { %p158_p3 = scmp.eq.s32.totalorder %s1846_s22, 1  ;;  %p1847_p5 = scmp.ge.s32.totalorder %s2280_s20, 1 }
   0xf   : > { %p2365_p4 = por %p2667_p1, %p58_p0  ;;  %p165_p7 = scmp.lt.s32.totalorder %s2280_s20, 3 }
  0x10   : > { %p2370_p6 = por %p158_p3, %p58_p0  ;;  %s2282_s26 = smov [#allocation8]  }
  0x11   : > { %p2375_p8 = pnand %p1847_p5, %p165_p7  ;;  %s177_s27 = sshll.u32 %s2282_s26, 4  ;;  %s178_s27 = int_to_ptr.vmem [resolvable:$true] %s177_s27 }
  0x12   : > { %s2671_s24 = scalar_select %p2370_p6, 1, 0 }
  0x13   : > { %p1977_p9 = pneg %p2375_p8  ;;  %s2283_s29 = smov [#allocation9]  }
  0x14   : > { %s190_s30 = sshll.u32 %s2283_s29, 4  ;;  %s2091_s5 = scalar_lea.vmem %s178_s27, 256  ;;  %s191_s30 = int_to_ptr.vmem [resolvable:$true] %s190_s30 }
  0x15   : > { %p2384_p11 = pnand %p1977_p9, %p2667_p1  ;;  %p2092_p13 = scmp.ne.s32.totalorder %s178_s27, %s2091_s5 }
  0x16   : > { %p2099_p5 = scmp.lt.s32.totalorder %s178_s27, %s178_s27  ;;  %p2100_p7 = scmp.lt.s32.totalorder %s2091_s5, %s2091_s5 }
  0x17   : > { %p2082_p12 = pneg %p2384_p11 }
  0x18   : > { %p2101_p10 = por %p2100_p7, %p2099_p5 }
  0x19   : > { %p2094_p0 = pnand %p2092_p13, %p2082_p12 }
  0x1b   : > { %p2095_p3 = pneg %p2094_p0 }
  0x1d   : > { %p2102_p9 = pnand %p2101_p10, %p2095_p3 }
  0x1f   : > { %2105 = shalt.err (!%p2102_p9)
}
  0x20   : > { %s2284_s6 = smov 128   ;;  %s2285_s7 = smov 8  }
  0x21   : > { %1980 = dma.hbm_to_vmem [thread:$0]  (!%p2384_p11), %s2664_s2, 256, %s178_s27, [#allocation7], %s2284_s6, %s2284_s6, %s2285_s7  }
  0x22   : > { %s2117_s10 = scalar_lea.vmem %s191_s30, 256  ;;  %p2125_p2 = scmp.lt.s32.totalorder %s191_s30, %s191_s30 }
  0x23   : > { %p2118_p1 = scmp.ne.s32.totalorder %s191_s30, %s2117_s10  ;;  %p2126_p6 = scmp.lt.s32.totalorder %s2117_s10, %s2117_s10 }
  0x25   : > { %p2120_p13 = pnand %p2118_p1, %p2082_p12  ;;  %p2127_p5 = por %p2126_p6, %p2125_p2 }
  0x27   : > { %p2121_p0 = pneg %p2120_p13 }
  0x29   : > { %p2128_p10 = pnand %p2127_p5, %p2121_p0 }
  0x2b   : > { %2131 = shalt.err (!%p2128_p10)
}
  0x2c   : > { %1983 = dma.hbm_to_vmem [thread:$0]  (!%p2384_p11), %s2665_s3, 256, %s191_s30, [#allocation10], %s2284_s6, %s2284_s6, %s2285_s7  }
  0x2d   : > { %s36_s13 = sadd.s32 1, %s2276_s19  ;;  %s45_s14 = sadd.s32 1, %s2268_s17 }
  0x2e   : > { %p38_p1 = scmp.ge.s32.totalorder %s36_s13, 2  ;;  %p52_p2 = scmp.ne.s32.totalorder %s2268_s17, %s2264_s16 }
  0x2f   : > { %p53_p6 = scmp.eq.s32.totalorder %s2280_s20, 0  ;;  %p1997_p12 = scmp.lt.s32.totalorder %s2280_s20, 2 }
  0x30   : > { %s2691_s13 = smov (%p38_p1, %s36_s13), 0  ;;  %p2674_p7 = scmp.eq.s32.totalorder %s2356_s21, 1 }
  0x31   : > { %p54_p3 = por %p53_p6, %p52_p2  ;;  %s40_s26 = ssub.s32 %s2276_s19, %s2691_s13 }
  0x32   : > { %p2416_p9 = por %p2674_p7, %p52_p2  ;;  %s204_s27 = sand.u32 1, %s2268_s17  }
  0x33   : > { %p43_p13 = scmp.eq.s32.totalorder %s40_s26, 0  ;;  %s1851_s28 = sshll.u32 %s204_s27, 3 }
  0x34   : > { %s1852_s29 = sshll.u32 %s2276_s19, 7  ;;  %s2676_s0 = sld [smem:[#allocation17_spill]] }
  0x35   : > { %s2425_s30 = scalar_select %p43_p13, %s2268_s17, %s45_s14  }
  0x36   : > { %s208_s8 = scalar_lea.vmem [#allocation3], %s1851_s28  ;;  %p2432_p11 = pnand %p1997_p12, %p54_p3 }
  0x37   : > { %s216_s9 = sshll.u32 %s208_s8, 4  ;;  %s2678_s1 = sld [smem:[#allocation18_spill]]  ;;  %s217_s9 = int_to_ptr.vmem [resolvable:$true] %s216_s9 }
  0x38   : > { %s205_s14 = scalar_lea.sflag [#allocation4], %s204_s27  ;;  %p2134_p0 = pneg %p2432_p11 }
  0x39   : > { %s2145_s5 = scalar_lea.vmem %s217_s9, 128  ;;  %s2286_s6 = smov [#allocation3]  }
  0x3a   : > { %s214_s7 = scalar_lea.hbm %s2676_s0, %s1852_s29  ;;  %p2146_p5 = scmp.ne.s32.totalorder %s217_s9, %s2145_s5 }
  0x3b   : > { %s2150_s8 = sshll.u32 %s2286_s6, 4  ;;  %s2151_s8 = int_to_ptr.vmem [resolvable:$false] %s2150_s8 }
  0x3c   : > { %p2148_p10 = pnand %p2146_p5, %p2134_p0  ;;  %s2152_s0 = scalar_lea.vmem %s2151_s8, 256 }
  0x3d   : > { %s2439_s26 = scalar_lea.hbm %s2678_s1, %s1852_s29  ;;  %p2153_p2 = scmp.lt.s32.totalorder %s217_s9, %s2151_s8 }
  0x3e   : > { %p2149_p1 = pneg %p2148_p10  ;;  %p2154_p6 = scmp.lt.s32.totalorder %s2152_s0, %s2145_s5 }
  0x40   : > { %p2155_p12 = por %p2154_p6, %p2153_p2 }
  0x42   : > { %p2156_p3 = pnand %p2155_p12, %p2149_p1 }
  0x44   : > { %2159 = shalt.err (!%p2156_p3)
}
  0x45   : > { %1987 = dma.hbm_to_vmem [thread:$0]  (!%p2432_p11), %s214_s7, 128, %s217_s9, %s205_s14  }
  0x46   : > { %s223_s27 = sand.u32 1, %s2280_s20   ;;  %s227_s29 = scalar_lea.vmem [#allocation6], %s1851_s28 }
  0x47   : > { %s234_s11 = sshll.u32 %s227_s29, 4  ;;  %s224_s12 = scalar_lea.sflag [#allocation7], %s223_s27  ;;  %s235_s11 = int_to_ptr.vmem [resolvable:$true] %s234_s11 }
  0x48   : > { %s2173_s1 = scalar_lea.vmem %s235_s11, 128  ;;  %s2287_s0 = smov [#allocation6]  }
  0x49   : > { %p2174_p7 = scmp.ne.s32.totalorder %s235_s11, %s2173_s1  ;;  %s2178_s5 = sshll.u32 %s2287_s0, 4  ;;  %s2179_s5 = int_to_ptr.vmem [resolvable:$false] %s2178_s5 }
  0x4a   : > { %s2180_s6 = scalar_lea.vmem %s2179_s5, 256  ;;  %p2181_p10 = scmp.lt.s32.totalorder %s235_s11, %s2179_s5 }
  0x4b   : > { %p2176_p13 = pnand %p2174_p7, %p2134_p0  ;;  %p2182_p1 = scmp.lt.s32.totalorder %s2180_s6, %s2173_s1 }
  0x4d   : > { %p2177_p5 = pneg %p2176_p13  ;;  %p2183_p2 = por %p2182_p1, %p2181_p10 }
  0x4f   : > { %p2184_p6 = pnand %p2183_p2, %p2177_p5 }
  0x51   : > { %2187 = shalt.err (!%p2184_p6)
}
  0x52   : > { %1990 = dma.hbm_to_vmem [thread:$0]  (!%p2432_p11), %s2439_s26, 128, %s235_s11, %s224_s12  }
  0x53   : > { %243 = sbr.rel (%p2375_p8) target bundleno = 1146 (0x47a), region = 36  ;;  %s2458_s28 = sand.u32 (!%p2375_p8), 1, %s2264_s16  }
  0x54   : > { %s2461_s7 = sshll.u32 (!%p2375_p8), %s2458_s28, 3  ;;  %s246_s1 = scalar_lea.sflag (!%p2375_p8), [#allocation4], %s2458_s28 }
  0x55   : > { %s249_s9 = scalar_lea.vmem (!%p2375_p8), [#allocation3], %s2461_s7 }
  0x58   : > { %2239 = dma.done.wait (%p2365_p4), %s246_s1, 128  }
  0x59   : > { %2241 = vsyncadd (%p2365_p4), %s246_s1, 4294967168  ;;  %s254_s25 = sand.u32 1, %s2356_s21   ;;  %s258_s26 = scalar_lea.vmem [#allocation6], %s2461_s7 }
  0x5a   : > { %s255_s10 = scalar_lea.sflag [#allocation7], %s254_s25 }
  0x5b   : > { %2243 = dma.done.wait (%p2365_p4), %s255_s10, 128  }
  0x5c   : > { %2245 = vsyncadd (%p2365_p4), %s255_s10, 4294967168  ;;  %p2679_p8 = scmp.eq.s32.totalorder %s2356_s21, 0 }
  0x5e   : > { %2247 = dma.done.wait (%p2679_p8), [#allocation7], 256   ;;  %p2680_p11 = pmov %p2679_p8 }
  0x5f   : > { %p2681_p0 = pmov %p2679_p8 }
  0x60   : > { %2249 = vsyncadd (%p2680_p11), [#allocation7], 4294967040 }
  0x61   : > { %2251 = dma.done.wait (%p2681_p0), [#allocation10], 256   ;;  %p2682_p12 = pmov %p2681_p0 }
  0x62   : > { %v2288_v0 = vmov 0.0   ;;  %vm2289_vm0 = vmmov 0   ;;  %v302_v1 = vld [vmem:[#allocation9 + $0x8] sm:$0xff]  ;;  %v301_v2 = vld [vmem:[#allocation9] sm:$0xff]  ;;  %vm303_vm1 = vcmask 130048   ;;  %v683_v4 = vld [vmem:[#allocation8 + $0x8] sm:$0xff]  ;;  %v392_v13 = vlaneseq }
  0x63   : > { %2253 = vsyncadd (%p2682_p12), [#allocation10], 4294967040  ;;  %1909 = vmatprep.subr.mxu0 %v2288_v0  ;;  %1913 = vmatprep.mubr.msk.f32.mxu0 %vm2289_vm0, %v2288_v0  ;;  %v300_v3 = vld [vmem:[%s258_s26] sm:$0xff]  ;;  %v682_v5 = vld [vmem:[#allocation8] sm:$0xff]  ;;  %s2290_s21 = smov 104   ;;  %s2291_s23 = smov 120  }
  0x64   : > { %1916 = vmatprep.subr.mxu1 %v2288_v0  ;;  %1920 = vmatprep.mubr.msk.f32.mxu1 %vm2289_vm0, %v2288_v0  ;;  %v681_v6 = vld [vmem:[%s249_s9] sm:$0xff]  ;;  %s2292_s14 = smov 112   ;;  %s2293_s8 = smov 96   ;;  %v2294_v11 = vmov 1983009808   ;;  %v393_v17 = vshrl.u32 %v392_v13, 7 }
  0x65   : > { %1910 = vmatpush3.msra.mxu0 %v302_v1  ;;  %1917 = vmatpush3.msra.mxu1 %v683_v4  ;;  %v390_v12 = vunpack.c.l.s4 %v2294_v11  ;;  %v2295_v14 = vmov 1934713408   ;;  %vm523_vm2 = vcmask 64512   ;;  %s2296_s27 = smov 16   ;;  %s2297_s29 = smov 8   ;;  %vm1704_vm3 = vcmask 195584  }
  0x66   : > { %1911 = vmatprep.subr.mxu0 %v2288_v0  ;;  %1918 = vmatprep.subr.mxu1 %v2288_v0  ;;  %v422_v15 = vunpack.c.l.s4 %v2295_v14  ;;  %s2298_s11 = smov 24   ;;  %s1884_s12 = sshll.u32 %s2272_s18, 7  ;;  %vm1706_vm4 = vcmask 261120  }
  0x67   : > { %1912 = vmatpush3.msra.mxu0 %v301_v2  ;;  %1919 = vmatpush3.msra.mxu1 %v682_v5  ;;  %v391_v16 = vunpack.c.0.s8 %v390_v12  ;;  %s295_s0 = scalar_lea.vmem [#allocation11], %s2461_s7  ;;  %s2620_s9 = scalar_lea.hbm %s2666_s4, %s1884_s12 }
  0x68   : > { %1914 = vmatmul.mubr.msk.f32.vlgmr.msra.gmra.mxu0 %vm303_vm1, %v300_v3  ;;  %1921 = vmatmul.mubr.msk.f32.vlgmr.msra.gmra.mxu1 %vm303_vm1, %v681_v6  ;;  %v423_v20 = vunpack.c.0.s8 %v422_v15  ;;  %s1723_s5 = sshll.u32 %s295_s0, 4  ;;  %s1709_s25 = scalar_lea.sflag [#allocation5], %s2458_s28  ;;  %s1724_s5 = int_to_ptr.vmem [resolvable:$true] %s1723_s5 }
  0x69   : > { %1923 = vmatprep.subr.mxu0 %v2288_v0  ;;  %1928 = vmatprep.subr.mxu1 %v2288_v0  ;;  %v2499_v21 = vsub.s32 %v391_v16, %v393_v17  ;;  %s2188_s10 = scalar_lea.vmem %s1724_s5, 128  ;;  %s2299_s18 = smov [#allocation11]  }
  0x6a   : > { %1925 = vmatprep.mubr.msk.f32.mxu0 %vm2289_vm0, %v2288_v0  ;;  %1930 = vmatprep.mubr.msk.f32.mxu1 %vm2289_vm0, %v2288_v0  ;;  %v2501_v28 = vsub.s32 %v423_v20, %v393_v17  ;;  %p2189_p4 = scmp.ne.s32.totalorder %s1724_s5, %s2188_s10  ;;  %s2192_s7 = sshll.u32 %s2299_s18, 4  ;;  %s2193_s7 = int_to_ptr.vmem [resolvable:$false] %s2192_s7 }
  0x6b   : > { %s2194_s26 = scalar_lea.vmem %s2193_s7, 256  ;;  %p2195_p13 = scmp.lt.s32.totalorder %s1724_s5, %s2193_s7 }
  0x6c   : > { %p2190_p3 = pnand %p2189_p4, %p2416_p9  ;;  %p2196_p5 = scmp.lt.s32.totalorder %s2194_s26, %s2188_s10 }
  0x6e   : > { %p2191_p7 = pneg %p2190_p3  ;;  %p2197_p10 = por %p2196_p5, %p2195_p13 }
  0x70   : > { %p2198_p1 = pnand %p2197_p10, %p2191_p7 }
 0x128   : > { %v373_v7 = vpop.f32.mrf.mxu0  ;;  %v754_v8 = vpop.f32.mrf.mxu1 }
 0x129   : > { %384 = vrot.lane.b32.xlu1 %v373_v7, %s2290_s21  ;;  %378 = vrot.lane.b32.xlu0 %v373_v7, %s2291_s23 }
 0x12a   : > { %v1915_v9 = vpop.f32.mrf.mxu0  ;;  %v1922_v10 = vpop.f32.mrf.mxu1 }
 0x12d   : > { %759 = vrot.lane.b32.xlu1 %v754_v8, %s2291_s23  ;;  %381 = vrot.lane.b32.xlu0 %v373_v7, %s2292_s14 }
 0x131   : > { %765 = vrot.lane.b32.xlu1 %v754_v8, %s2290_s21  ;;  %762 = vrot.lane.b32.xlu0 %v754_v8, %s2292_s14 }
 0x135   : > { %528 = vrot.lane.b32.xlu0 %v373_v7, %s2293_s8 }
 0x19b   : > { %v385_v18 = vpop.permute.xlu1 %384  ;;  %v379_v19 = vpop.permute.xlu0 %378 }
 0x19c   : > { %530 = vrot.lane.b32.xlu1 %v379_v19, %s2293_s8  ;;  %v403_v22 = vcombine.low %v379_v19, %v385_v18  ;;  %v404_v23 = vcombine.high %v379_v19, %v385_v18 }
 0x19e   : > { %v411_v29 = vrot.slane %v403_v22, %v2499_v21  ;;  %v418_v30 = vrot.slane %v404_v23, %v2499_v21 }
 0x19f   : > { %v760_v24 = vpop.permute.xlu1 %759  ;;  %v382_v25 = vpop.permute.xlu0 %381 }
 0x1a0   : > { %v387_v26 = vcombine.low %v373_v7, %v382_v25  ;;  %v388_v27 = vcombine.high %v373_v7, %v382_v25  ;;  %534 = vrot.lane.b32.xlu1 %v385_v18, %s2293_s8  ;;  %532 = vrot.lane.b32.xlu0 %v382_v25, %s2293_s8 }
 0x1a2   : > { %v395_v31 = vrot.slane %v387_v26, %v2499_v21  ;;  %v402_v32 = vrot.slane %v388_v27, %v2499_v21 }
 0x1a3   : > { %v766_v33 = vpop.permute.xlu1 %765  ;;  %v763_v34 = vpop.permute.xlu0 %762 }
 0x1a4   : > { %v419_v35 = vcombine.low %v395_v31, %v411_v29  ;;  %v420_v36 = vcombine.high %v395_v31, %v411_v29  ;;  %v435_v37 = vcombine.low %v402_v32, %v418_v30  ;;  %v436_v38 = vcombine.high %v402_v32, %v418_v30 }
 0x1a5   : > { %v784_v39 = vcombine.low %v760_v24, %v766_v33  ;;  %v785_v40 = vcombine.high %v760_v24, %v766_v33  ;;  %v768_v41 = vcombine.low %v754_v8, %v763_v34  ;;  %v769_v42 = vcombine.high %v754_v8, %v763_v34 }
 0x1a6   : > { %v427_v43 = vrot.slane %v419_v35, %v2501_v28  ;;  %v434_v44 = vrot.slane %v420_v36, %v2501_v28  ;;  %v443_v45 = vrot.slane %v435_v37, %v2501_v28  ;;  %v450_v46 = vrot.slane %v436_v38, %v2501_v28 }
 0x1a7   : > { %v792_v47 = vrot.slane %v784_v39, %v2499_v21  ;;  %v799_v48 = vrot.slane %v785_v40, %v2499_v21  ;;  %v776_v49 = vrot.slane %v768_v41, %v2499_v21  ;;  %v783_v50 = vrot.slane %v769_v42, %v2499_v21  ;;  %v529_v42 = vpop.permute.xlu0 %528 }
 0x1a8   : > { %v455_v51 = vcombine.low %v427_v43, %v434_v44  ;;  %v1862_v52 = vcombine.high %v427_v43, %v434_v44  ;;  %v471_v53 = vcombine.low %v443_v45, %v450_v46  ;;  %v1863_v54 = vcombine.high %v443_v45, %v450_v46 }
 0x1a9   : > { %v800_v55 = vcombine.low %v776_v49, %v792_v47  ;;  %v801_v56 = vcombine.high %v776_v49, %v792_v47  ;;  %v816_v57 = vcombine.low %v783_v50, %v799_v48  ;;  %v817_v58 = vcombine.high %v783_v50, %v799_v48 }
 0x1aa   : > { %v462_v59 = vrot.slane %v455_v51, %v2499_v21  ;;  %v470_v60 = vrot.slane %v1862_v52, %v2499_v21  ;;  %v478_v61 = vrot.slane %v471_v53, %v2499_v21  ;;  %v486_v62 = vrot.slane %v1863_v54, %v2499_v21 }
 0x1ab   : > { %v808_v63 = vrot.slane %v800_v55, %v2501_v28  ;;  %v815_v1 = vrot.slane %v801_v56, %v2501_v28  ;;  %v824_v2 = vrot.slane %v816_v57, %v2501_v28  ;;  %v831_v3 = vrot.slane %v817_v58, %v2501_v28 }
 0x1ac   : > { %v487_v4 = vcombine.low %v462_v59, %v470_v60  ;;  %v488_v5 = vcombine.high %v462_v59, %v470_v60  ;;  %v503_v6 = vcombine.low %v478_v61, %v486_v62  ;;  %v504_v7 = vcombine.high %v478_v61, %v486_v62 }
 0x1ad   : > { %v836_v8 = vcombine.low %v808_v63, %v815_v1  ;;  %v1867_v9 = vcombine.high %v808_v63, %v815_v1  ;;  %v852_v10 = vcombine.low %v824_v2, %v831_v3  ;;  %v1868_v11 = vcombine.high %v824_v2, %v831_v3 }
 0x1ae   : > { %v495_v12 = vrot.slane %v487_v4, %v2501_v28  ;;  %v502_v13 = vrot.slane %v488_v5, %v2501_v28  ;;  %v511_v14 = vrot.slane %v503_v6, %v2501_v28  ;;  %v518_v15 = vrot.slane %v504_v7, %v2501_v28 }
 0x1af   : > { %v843_v16 = vrot.slane %v836_v8, %v2499_v21  ;;  %v851_v17 = vrot.slane %v1867_v9, %v2499_v21  ;;  %v859_v18 = vrot.slane %v852_v10, %v2499_v21  ;;  %v867_v19 = vrot.slane %v1868_v11, %v2499_v21 }
 0x1b0   : > { %v519_v20 = vcombine.low %v495_v12, %v511_v14  ;;  %v520_v22 = vcombine.high %v495_v12, %v511_v14  ;;  %v521_v23 = vcombine.low %v502_v13, %v518_v15  ;;  %v522_v24 = vcombine.high %v502_v13, %v518_v15 }
 0x1b1   : > { %v868_v25 = vcombine.low %v843_v16, %v851_v17  ;;  %v884_v26 = vcombine.low %v859_v18, %v867_v19  ;;  %v869_v27 = vcombine.high %v843_v16, %v851_v17  ;;  %v885_v29 = vcombine.high %v859_v18, %v867_v19 }
 0x1b2   : > { %524 = vst.msk [vmem:[#allocation2] sm:$0xff] %vm523_vm2, %v519_v20  ;;  %525 = vst.msk [vmem:[#allocation2 + $0x8] sm:$0xff] %vm523_vm2, %v520_v22 }
 0x1b3   : > { %526 = vst.msk [vmem:[#allocation2 + $0x10] sm:$0xff] %vm523_vm2, %v521_v23  ;;  %527 = vst.msk [vmem:[#allocation2 + $0x18] sm:$0xff] %vm523_vm2, %v522_v24  ;;  %v876_v30 = vrot.slane %v868_v25, %v2501_v28  ;;  %v892_v31 = vrot.slane %v884_v26, %v2501_v28  ;;  %v883_v34 = vrot.slane %v869_v27, %v2501_v28 }
 0x1b4   : > { %v899_v37 = vrot.slane %v885_v29, %v2501_v28 }
 0x1b5   : > { %v900_v35 = vcombine.low %v876_v30, %v892_v31  ;;  %v901_v36 = vcombine.high %v876_v30, %v892_v31 }
 0x1b6   : > { %v902_v40 = vcombine.low %v883_v34, %v899_v37  ;;  %v903_v41 = vcombine.high %v883_v34, %v899_v37 }
 0x1b9   : > { %v904_v32 = vld [vmem:[#allocation2] sm:$0xff]  ;;  %v905_v33 = vld [vmem:[#allocation2 + $0x8] sm:$0xff] }
 0x1ba   : > { %1924 = vmatpush3.xpose.msk.msra.mxu0 %vm523_vm2, %v904_v32  ;;  %1929 = vmatpush3.xpose.msk.msra.mxu1 %vm523_vm2, %v905_v33  ;;  %v906_v38 = vld [vmem:[#allocation2 + $0x10] sm:$0xff]  ;;  %v907_v39 = vld [vmem:[#allocation2 + $0x18] sm:$0xff] }
 0x1bb   : > { %1933 = vmatprep.subr.mxu0 %v2288_v0  ;;  %1938 = vmatprep.subr.mxu1 %v2288_v0 }
 0x1bd   : > { %1926 = vmatmul.mubr.msk.f32.vlgmr.msra.gmra.mxu0 %vm523_vm2, %v900_v35  ;;  %1931 = vmatmul.mubr.msk.f32.vlgmr.msra.gmra.mxu1 %vm523_vm2, %v901_v36 }
 0x1be   : > { %1934 = vmatpush3.xpose.msk.msra.mxu0 %vm523_vm2, %v906_v38  ;;  %1939 = vmatpush3.xpose.msk.msra.mxu1 %vm523_vm2, %v907_v39 }
 0x1bf   : > { %1935 = vmatprep.mubr.msk.f32.mxu0 %vm2289_vm0, %v2288_v0  ;;  %1940 = vmatprep.mubr.msk.f32.mxu1 %vm2289_vm0, %v2288_v0 }
 0x1c0   : > { %1943 = vmatprep.subr.mxu0 %v2288_v0  ;;  %1948 = vmatprep.subr.mxu1 %v2288_v0 }
 0x1c1   : > { %1936 = vmatmul.mubr.msk.f32.vlgmr.msra.gmra.mxu0 %vm523_vm2, %v902_v40  ;;  %1941 = vmatmul.mubr.msk.f32.vlgmr.msra.gmra.mxu1 %vm523_vm2, %v903_v41 }
 0x1c2   : > { %1945 = vmatprep.mubr.msk.f32.mxu0 %vm2289_vm0, %v2288_v0  ;;  %1950 = vmatprep.mubr.msk.f32.mxu1 %vm2289_vm0, %v2288_v0 }
 0x20e   : > { %v531_v43 = vpop.permute.xlu1 %530 }
 0x212   : > { %v535_v44 = vpop.permute.xlu1 %534  ;;  %v533_v45 = vpop.permute.xlu0 %532 }
 0x213   : > { %v556_v46 = vcombine.low %v531_v43, %v535_v44  ;;  %v557_v47 = vcombine.high %v531_v43, %v535_v44  ;;  %v540_v48 = vcombine.low %v529_v42, %v533_v45  ;;  %v541_v49 = vcombine.high %v529_v42, %v533_v45 }
 0x215   : > { %v564_v50 = vrot.slane %v556_v46, %v2499_v21  ;;  %v571_v51 = vrot.slane %v557_v47, %v2499_v21  ;;  %v548_v52 = vrot.slane %v540_v48, %v2499_v21  ;;  %v555_v53 = vrot.slane %v541_v49, %v2499_v21 }
 0x217   : > { %v572_v54 = vcombine.low %v548_v52, %v564_v50  ;;  %v573_v55 = vcombine.high %v548_v52, %v564_v50  ;;  %v588_v56 = vcombine.low %v555_v53, %v571_v51  ;;  %v589_v57 = vcombine.high %v555_v53, %v571_v51 }
 0x219   : > { %v580_v58 = vrot.slane %v572_v54, %v2501_v28  ;;  %v587_v59 = vrot.slane %v573_v55, %v2501_v28  ;;  %v596_v60 = vrot.slane %v588_v56, %v2501_v28  ;;  %v603_v61 = vrot.slane %v589_v57, %v2501_v28 }
 0x21b   : > { %v608_v62 = vcombine.low %v580_v58, %v587_v59  ;;  %v1864_v63 = vcombine.high %v580_v58, %v587_v59  ;;  %v624_v1 = vcombine.low %v596_v60, %v603_v61  ;;  %v1865_v2 = vcombine.high %v596_v60, %v603_v61 }
 0x21d   : > { %v615_v3 = vrot.slane %v608_v62, %v2499_v21  ;;  %v623_v4 = vrot.slane %v1864_v63, %v2499_v21  ;;  %v631_v5 = vrot.slane %v624_v1, %v2499_v21  ;;  %v639_v6 = vrot.slane %v1865_v2, %v2499_v21 }
 0x21f   : > { %v640_v7 = vcombine.low %v615_v3, %v623_v4  ;;  %v641_v8 = vcombine.high %v615_v3, %v623_v4  ;;  %v656_v9 = vcombine.low %v631_v5, %v639_v6  ;;  %v657_v10 = vcombine.high %v631_v5, %v639_v6 }
 0x221   : > { %v648_v11 = vrot.slane %v640_v7, %v2501_v28  ;;  %v655_v12 = vrot.slane %v641_v8, %v2501_v28  ;;  %v664_v13 = vrot.slane %v656_v9, %v2501_v28  ;;  %v671_v14 = vrot.slane %v657_v10, %v2501_v28 }
 0x223   : > { %v672_v15 = vcombine.low %v648_v11, %v664_v13  ;;  %v673_v16 = vcombine.high %v648_v11, %v664_v13  ;;  %v674_v17 = vcombine.low %v655_v12, %v671_v14  ;;  %v675_v18 = vcombine.high %v655_v12, %v671_v14 }
 0x225   : > { %677 = vst.msk [vmem:[#allocation2 + $0x20] sm:$0xff] %vm523_vm2, %v672_v15  ;;  %678 = vst.msk [vmem:[#allocation2 + $0x28] sm:$0xff] %vm523_vm2, %v673_v16 }
 0x226   : > { %679 = vst.msk [vmem:[#allocation2 + $0x30] sm:$0xff] %vm523_vm2, %v674_v17  ;;  %680 = vst.msk [vmem:[#allocation2 + $0x38] sm:$0xff] %vm523_vm2, %v675_v18 }
 0x22c   : > { %v909_v19 = vld [vmem:[#allocation2 + $0x20] sm:$0xff]  ;;  %v910_v20 = vld [vmem:[#allocation2 + $0x28] sm:$0xff] }
 0x22d   : > { %1944 = vmatpush3.msra.mxu0 %v909_v19  ;;  %1949 = vmatpush3.msra.mxu1 %v910_v20  ;;  %v912_v49 = vld [vmem:[#allocation2 + $0x38] sm:$0xff]  ;;  %v911_v50 = vld [vmem:[#allocation2 + $0x30] sm:$0xff] }
 0x22e   : > { %1953 = vmatprep.subr.mxu0 %v2288_v0  ;;  %1958 = vmatprep.subr.mxu1 %v2288_v0 }
 0x27d   : > { %v986_v22 = vpop.f32.mrf.mxu0  ;;  %v1062_v23 = vpop.f32.mrf.mxu1 }
 0x27e   : > { %v1221_v24 = vsel %vm523_vm2, %v1062_v23, -inf  ;;  %v1218_v25 = vsel %vm523_vm2, %v986_v22, -inf }
 0x27f   : > { %1222 = vmax.xlane.f32.xlu1 %v1221_v24  ;;  %v1932_v26 = vpop.f32.mrf.mxu1  ;;  %1219 = vmax.xlane.f32.xlu0 %v1218_v25  ;;  %v1927_v27 = vpop.f32.mrf.mxu0 }
 0x281   : > { %v1138_v29 = vpop.f32.mrf.mxu0  ;;  %v1214_v30 = vpop.f32.mrf.mxu1 }
 0x282   : > { %v1227_v31 = vsel %vm523_vm2, %v1214_v30, -inf  ;;  %v1224_v32 = vsel %vm523_vm2, %v1138_v29, -inf }
 0x283   : > { %1228 = vmax.xlane.f32.xlu1 %v1227_v31  ;;  %v1942_v33 = vpop.f32.mrf.mxu1  ;;  %1225 = vmax.xlane.f32.xlu0 %v1224_v32  ;;  %v1937_v34 = vpop.f32.mrf.mxu0 }
 0x308   : > { %v1223_v35 = vpop.xlane.xlu1 %1222  ;;  %v1220_v36 = vpop.xlane.xlu0 %1219 }
 0x309   : > { %v1231_v37 = vsub.f32 %v1062_v23, %v1223_v35  ;;  %v1230_v38 = vsub.f32 %v986_v22, %v1220_v36 }
 0x30b   : > { %v1236_v39 = vmul.f32 1.442695, %v1231_v37  ;;  %v1234_v40 = vmul.f32 1.442695, %v1230_v38 }
 0x30c   : > { %v1229_v41 = vpop.xlane.xlu1 %1228  ;;  %v1226_v42 = vpop.xlane.xlu0 %1225 }
 0x30d   : > { %2064 = vpow2.f32 %v1236_v39  ;;  %v1233_v43 = vsub.f32 %v1214_v30, %v1229_v41  ;;  %v1232_v44 = vsub.f32 %v1138_v29, %v1226_v42 }
 0x30e   : > { %2066 = vpow2.f32 %v1234_v40 }
 0x30f   : > { %v1240_v45 = vmul.f32 1.442695, %v1233_v43  ;;  %v1238_v46 = vmul.f32 1.442695, %v1232_v44 }
 0x311   : > { %2068 = vpow2.f32 %v1240_v45 }
 0x312   : > { %2070 = vpow2.f32 %v1238_v46 }
 0x31a   : > { %v2065_v47 = vpop.eup %2064 }
 0x31b   : > { %v2067_v48 = vpop.eup %2066  ;;  %1951 = vmatmul.mubr.msk.f32.vlgmr.msra.gmra.mxu1 %vm523_vm2, %v2065_v47  ;;  %v1245_v54 = vsel %vm523_vm2, %v2065_v47, 0.0 }
 0x31c   : > { %1946 = vmatmul.mubr.msk.f32.vlgmr.msra.gmra.mxu0 %vm523_vm2, %v2067_v48  ;;  %1959 = vmatpush3.msra.mxu1 %v912_v49  ;;  %v1242_v51 = vsel %vm523_vm2, %v2067_v48, 0.0 }
 0x31d   : > { %1954 = vmatpush3.msra.mxu0 %v911_v50  ;;  %1243 = vadd.xlane.f32.xlu0 %v1242_v51 }
 0x31e   : > { %v2069_v52 = vpop.eup %2068  ;;  %1955 = vmatprep.mubr.msk.f32.mxu0 %vm2289_vm0, %v2288_v0  ;;  %1960 = vmatprep.mubr.msk.f32.mxu1 %vm2289_vm0, %v2288_v0 }
 0x31f   : > { %v2071_v53 = vpop.eup %2070  ;;  %1961 = vmatmul.mubr.msk.f32.vlgmr.msra.gmra.mxu1 %vm523_vm2, %v2069_v52  ;;  %v1251_v56 = vsel %vm523_vm2, %v2069_v52, 0.0 }
 0x320   : > { %1956 = vmatmul.mubr.msk.f32.vlgmr.msra.gmra.mxu0 %vm523_vm2, %v2071_v53  ;;  %v1248_v55 = vsel %vm523_vm2, %v2071_v53, 0.0 }
 0x321   : > { %1246 = vadd.xlane.f32.xlu0 %v1245_v54  ;;  %1249 = vadd.xlane.f32.xlu1 %v1248_v55 }
 0x325   : > { %1252 = vadd.xlane.f32.xlu0 %v1251_v56 }
 0x3a6   : > { %v1244_v57 = vpop.xlane.xlu0 %1243 }
 0x3a7   : > { %2072 = vrcp.f32 %v1244_v57 }
 0x3aa   : > { %v1247_v58 = vpop.xlane.xlu0 %1246  ;;  %v1250_v60 = vpop.xlane.xlu1 %1249 }
 0x3ab   : > { %2074 = vrcp.f32 %v1247_v58 }
 0x3ae   : > { %v1253_v59 = vpop.xlane.xlu0 %1252 }
 0x3af   : > { %2076 = vrcp.f32 %v1253_v59 }
 0x3b0   : > { %2078 = vrcp.f32 %v1250_v60 }
 0x3b4   : > { %v2073_v62 = vpop.eup %2072 }
 0x3b8   : > { %v2075_v1 = vpop.eup %2074 }
 0x3bc   : > { %v2077_v3 = vpop.eup %2076 }
 0x3bd   : > { %v2079_v5 = vpop.eup %2078 }
 0x3db   : > { %v1396_v0 = vpop.f32.mrf.mxu1 }
 0x3dc   : > { %v1323_v61 = vpop.f32.mrf.mxu0  ;;  %v1551_v6 = vmul.f32 %v2075_v1, %v1396_v0 }
 0x3dd   : > { %v1952_v63 = vpop.f32.mrf.mxu1  ;;  %v1550_v9 = vmul.f32 %v2073_v62, %v1323_v61 }
 0x3de   : > { %v1947_v2 = vpop.f32.mrf.mxu0 }
 0x3df   : > { %v1542_v4 = vpop.f32.mrf.mxu1 }
 0x3e0   : > { %v1469_v7 = vpop.f32.mrf.mxu0  ;;  %v1553_v8 = vmul.f32 %v2077_v3, %v1542_v4 }
 0x3e1   : > { %v1552_v10 = vmul.f32 %v2079_v5, %v1469_v7  ;;  %v1962_v11 = vpop.f32.mrf.mxu1 }
 0x3e2   : > { %v1570_v12 = vcombine.low %v1551_v6, %v1553_v8  ;;  %v1571_v13 = vcombine.high %v1551_v6, %v1553_v8  ;;  %v1957_v14 = vpop.f32.mrf.mxu0 }
 0x3e3   : > { %v1554_v15 = vcombine.low %v1550_v9, %v1552_v10  ;;  %v1555_v16 = vcombine.high %v1550_v9, %v1552_v10 }
 0x3e4   : > { %v1578_v17 = vrot.slane %v1570_v12, %v2499_v21  ;;  %v1585_v18 = vrot.slane %v1571_v13, %v2499_v21 }
 0x3e5   : > { %v1562_v19 = vrot.slane %v1554_v15, %v2499_v21  ;;  %v1569_v20 = vrot.slane %v1555_v16, %v2499_v21 }
 0x3e7   : > { %v1586_v22 = vcombine.low %v1562_v19, %v1578_v17  ;;  %v1587_v23 = vcombine.high %v1562_v19, %v1578_v17  ;;  %v1602_v24 = vcombine.low %v1569_v20, %v1585_v18  ;;  %v1603_v25 = vcombine.high %v1569_v20, %v1585_v18 }
 0x3e9   : > { %v1594_v26 = vrot.slane %v1586_v22, %v2501_v28  ;;  %v1601_v27 = vrot.slane %v1587_v23, %v2501_v28  ;;  %v1610_v29 = vrot.slane %v1602_v24, %v2501_v28  ;;  %v1617_v30 = vrot.slane %v1603_v25, %v2501_v28 }
 0x3eb   : > { %v1622_v31 = vcombine.low %v1594_v26, %v1601_v27  ;;  %v1881_v32 = vcombine.high %v1594_v26, %v1601_v27  ;;  %v1638_v33 = vcombine.low %v1610_v29, %v1617_v30  ;;  %v1882_v34 = vcombine.high %v1610_v29, %v1617_v30 }
 0x3ed   : > { %v1629_v35 = vrot.slane %v1622_v31, %v2499_v21  ;;  %v1637_v36 = vrot.slane %v1881_v32, %v2499_v21  ;;  %v1645_v37 = vrot.slane %v1638_v33, %v2499_v21  ;;  %v1653_v38 = vrot.slane %v1882_v34, %v2499_v21 }
 0x3ef   : > { %v1655_v39 = vcombine.high %v1629_v35, %v1637_v36  ;;  %v1671_v40 = vcombine.high %v1645_v37, %v1653_v38  ;;  %v1654_v41 = vcombine.low %v1629_v35, %v1637_v36  ;;  %v1670_v42 = vcombine.low %v1645_v37, %v1653_v38 }
 0x3f1   : > { %v1669_v43 = vrot.slane %v1655_v39, %v2501_v28  ;;  %v1685_v44 = vrot.slane %v1671_v40, %v2501_v28  ;;  %v1662_v45 = vrot.slane %v1654_v41, %v2501_v28  ;;  %v1678_v46 = vrot.slane %v1670_v42, %v2501_v28 }
 0x3f3   : > { %v1688_v47 = vcombine.low %v1669_v43, %v1685_v44  ;;  %v1687_v48 = vcombine.high %v1662_v45, %v1678_v46  ;;  %v1686_v49 = vcombine.low %v1662_v45, %v1678_v46  ;;  %v1689_v21 = vcombine.high %v1669_v43, %v1685_v44 }
 0x3f5   : > { %1695 = vrot.lane.b32.xlu0 %v1688_v47, %s2296_s27  ;;  %1691 = vrot.lane.b32.xlu1 %v1687_v48, %s2297_s29 }
 0x3f9   : > { %1699 = vrot.lane.b32.xlu1 %v1689_v21, %s2298_s11 }
 0x467   : > { %v1692_v50 = vpop.permute.xlu1 %1691  ;;  %v1696_v51 = vpop.permute.xlu0 %1695 }
 0x468   : > { %v1702_v52 = vsel %vm523_vm2, %v1686_v49, %v1692_v50 }
 0x469   : > { %v1703_v53 = vsel %vm303_vm1, %v1702_v52, %v1696_v51 }
 0x46b   : > { %v1700_v28 = vpop.permute.xlu1 %1699 }
 0x46c   : > { %v1705_v54 = vsel %vm1704_vm3, %v1703_v53, %v1700_v28 }
 0x46d   : > { %1707 = vst.msk [vmem:[%s295_s0] sm:$0xff] %vm1706_vm4, %v1705_v54 }
 0x46e   : > { %2201 = shalt.err (!%p2198_p1)
}
 0x46f   : > { %s2202_s21 = scalar_lea.hbm %s2620_s9, 128  ;;  %s2206_s14 = scalar_lea.hbm %s2666_s4, 256 }
 0x470   : > { %p2203_p2 = scmp.ne.s32.totalorder %s2620_s9, %s2202_s21  ;;  %p2207_p11 = scmp.lt.s32.totalorder %s2620_s9, %s2666_s4 }
 0x471   : > { %p2208_p0 = scmp.lt.s32.totalorder %s2206_s14, %s2202_s21 }
 0x472   : > { %p2204_p6 = pnand %p2203_p2, %p2416_p9 }
 0x473   : > { %p2209_p12 = por %p2208_p0, %p2207_p11 }
 0x474   : > { %p2205_p8 = pneg %p2204_p6 }
 0x476   : > { %p2210_p4 = pnand %p2209_p12, %p2205_p8 }
 0x478   : > { %2213 = shalt.err (!%p2210_p4)
}
 0x479   : > { %1975 = dma.vmem_to_hbm [thread:$0]  (%p2416_p9), %s1724_s5, 128, %s2620_s9, %s1709_s25  }
 0x47a PF: > { %s1735_s29 = sand.u32 1, %s2260_s15   ;;  %p2683_p3 = scmp.ne.s32.totalorder %s2671_s24, 0 }
 0x47b   : > { %p2684_p7 = scmp.ge.s32.totalorder %s2280_s20, 2  ;;  %s1736_s11 = scalar_lea.sflag [#allocation5], %s1735_s29 }
 0x47d   : > { %p1992_p13 = pnand %p2684_p7, %p2683_p3 }
 0x47f   : > { %p1993_p5 = pneg %p1992_p13 }
 0x481   : > { %2255 = dma.done.wait (%p1993_p5), %s1736_s11, 128  }
 0x482   : > { %2257 = vsyncadd (%p1993_p5), %s1736_s11, 4294967168  ;;  %s24_s20 = sadd.s32 1, %s2280_s20   ;;  %s2685_s15 = smov %s2264_s16 }
 0x483   : > { %p21_p10 = scmp.ge.s32.totalorder %s24_s20, 4   ;;  %s2686_s16 = smov %s2268_s17 }
 0x484   : > { %s2687_s17 = smov %s2425_s30  ;;  %s2688_s18 = smov %s2276_s19 }
 0x485   : > { %s2689_s19 = smov %s2691_s13  ;;  %23 = sbr.rel (!%p21_p10) target bundleno = 12 (0xc), region = 108 }
 0x48a   :  { %1741 = vsyncpa [#allocation4], 1 }
 0x48b   :  { %1743 = vsyncpa [#allocation4 + $0x1], 1 }
 0x48c   :  { %1744 = vsyncpa [#allocation7], 1 }
 0x48d   :  { %1746 = vsyncpa [#allocation7 + $0x1], 1 }
 0x48e   :  { %1747 = vsyncpa [#allocation10], 1 }
 0x48f   :  { %1748 = vsyncpa [#allocation5], 1 }
 0x490   :  { %1750 = vsyncpa [#allocation5 + $0x1], 1 }

</bundles_post_ra>
